<compile_context>
chip_gen: v5e
topology: v5e:2x2
jax: 0.10.0
libtpu: 0.0.40
codegen_flags: <defaults>
</compile_context>

<pallas_src>
import functools

import jax
import jax.numpy as jnp
from jax.experimental import pallas as pl
from jax.experimental.pallas import tpu as pltpu


def _round_up(n: int, m: int) -> int:
    return ((n + m - 1) // m) * m


def _prenet_fused_kernel(*refs, num_layers, dropout_rate, use_dropout):
    """refs = (x, W_0..W_{L-1}, [rand_0..rand_{L-1}], out)."""
    x_ref = refs[0]
    w_refs = refs[1:1 + num_layers]
    if use_dropout:
        r_refs = refs[1 + num_layers:1 + 2 * num_layers]
        o_ref = refs[1 + 2 * num_layers]
        thr = jnp.uint32(min(int(round(dropout_rate * 4294967296.0)), 4294967295))
        scale = jnp.float32(1.0 / (1.0 - dropout_rate))
    else:
        r_refs = (None,) * num_layers
        o_ref = refs[1 + num_layers]

    h = x_ref[...]
    for li in range(num_layers):
        # MXU matmul with f32 accumulation, then ReLU on the VPU.
        h = jnp.dot(h, w_refs[li][...], preferred_element_type=jnp.float32)
        h = jnp.maximum(h, 0.0)
        if use_dropout:
            # keep w.p. (1 - p): integer threshold compare, no float uniform.
            keep = r_refs[li][...] >= thr
            h = jnp.where(keep, h * scale, jnp.float32(0.0))
    o_ref[...] = h.astype(o_ref.dtype)


def prenet_forward(x, weights, *, dropout_rate=0.5, training=True,
                   rng_key=None, block_m=512):
    """Replicates PreNet.forward: for each layer, dropout(relu(linear(x)))."""
    orig_lead = x.shape[:-1]
    in_dim = x.shape[-1]
    x2d = x.reshape(-1, in_dim).astype(jnp.float32)
    M = x2d.shape[0]

    num_layers = len(weights)
    out_dims = [int(w.shape[1]) for w in weights]
    out_pads = [_round_up(n, 128) for n in out_dims]   # lane-dense outputs

    # Zero-pad weights: (in_pad, out_pad).  Padded columns of every layer's
    # activation are exactly 0 (relu(x @ 0) = 0, dropout(0) = 0), so padding
    # does not change the real columns of the result.
    w_padded = []
    in_pad = in_dim
    for w, n, n_pad in zip(weights, out_dims, out_pads):
        k = int(w.shape[0])
        wp = jnp.zeros((in_pad, n_pad), jnp.float32).at[:k, :n].set(
            w.astype(jnp.float32))
        w_padded.append(wp)
        in_pad = n_pad

    # Tile M: block must be a multiple of 8 (sublane); pad rows with zeros.
    bm = min(block_m, _round_up(M, 8))
    M_pad = _round_up(M, bm)
    if M_pad != M:
        x2d = jnp.pad(x2d, ((0, M_pad - M), (0, 0)))

    # Host-side random bits for dropout, one lane-dense uint32 slab per layer.
    use_dropout = bool(training) and dropout_rate > 0.0
    rand = []
    if use_dropout:
        if rng_key is None:
            rng_key = jax.random.PRNGKey(0)
        for kk, n_pad in zip(jax.random.split(rng_key, num_layers), out_pads):
            rand.append(jax.random.bits(kk, (M_pad, n_pad), jnp.uint32))

    grid = (M_pad // bm,)
    in_specs = [pl.BlockSpec((bm, in_dim), lambda i: (i, 0))]
    # Weights: constant index_map -> stay VMEM-resident across all M tiles.
    in_specs += [pl.BlockSpec(wp.shape, lambda i: (0, 0)) for wp in w_padded]
    if use_dropout:
        in_specs += [pl.BlockSpec((bm, n_pad), lambda i: (i, 0))
                     for n_pad in out_pads]
    out_spec = pl.BlockSpec((bm, out_pads[-1]), lambda i: (i, 0))

    kernel = functools.partial(
        _prenet_fused_kernel,
        num_layers=num_layers,
        dropout_rate=float(dropout_rate),
        use_dropout=use_dropout,
    )

    out_padded = pl.pallas_call(
        kernel,
        out_shape=jax.ShapeDtypeStruct((M_pad, out_pads[-1]), jnp.float32),
        grid_spec=pltpu.PrefetchScalarGridSpec(
            num_scalar_prefetch=0,
            grid=grid,
            in_specs=in_specs,
            out_specs=out_spec,
        ),
        compiler_params=pltpu.CompilerParams(
            dimension_semantics=("parallel",),
        ),
    )(x2d, *w_padded, *rand)

    out = out_padded[:M, :out_dims[-1]]
    return out.reshape(*orig_lead, out_dims[-1])


def init_prenet_params(key, in_dim, sizes):
    """Deterministic synthetic weights; weight[i] has shape (in_size, out_size)
    (i.e. the transpose of torch's nn.Linear.weight)."""
    in_sizes = [in_dim] + sizes[:-1]
    weights = []
    for in_size, out_size in zip(in_sizes, sizes):
        key, sub = jax.random.split(key)
        w = jax.random.normal(sub, (in_size, out_size), dtype=jnp.float32)
        w = w * (1.0 / jnp.sqrt(jnp.float32(in_size)))
        weights.append(w)
    return weights


if __name__ == "__main__":
    # Module config: PreNet(in_dim=32, sizes=[64, 32], dropout_rate=0.5)
    in_dim = 32
    sizes = [64, 32]
    dropout_rate = 0.5

    B, T = 2, 8  # input (batch, seq, in_dim) -> (2, 8, 32)
    key = jax.random.PRNGKey(0)
    kx, kw, kd = jax.random.split(key, 3)
    x = jax.random.normal(kx, (B, T, in_dim), dtype=jnp.float32)
    weights = init_prenet_params(kw, in_dim, sizes)

    # Training-mode forward (with dropout).
    out = prenet_forward(
        x, weights, dropout_rate=dropout_rate, training=True, rng_key=kd
    )
    out = jax.block_until_ready(out)
    assert out.shape == (B, T, sizes[-1]), out.shape
    assert out.dtype == jnp.float32

    # Eval-mode forward (dropout off) checked against pure JAX.
    out_eval = prenet_forward(x, weights, dropout_rate=dropout_rate, training=False)
    out_eval = jax.block_until_ready(out_eval)
    ref = x
    for w in weights:
        ref = jnp.maximum(jnp.einsum("btk,kn->btn", ref, w), 0.0)
    assert jnp.allclose(out_eval, ref, atol=1e-4, rtol=1e-4)

    print("KERNEL_OK")
</pallas_src>

<mosaic_0001>
module attributes {stable_mosaic.version = 11 : i64} {
  func.func @_prenet_fused_kernel(%arg0: i32, %arg1: memref<16x32xf32, #tpu.memory_space<vmem>>, %arg2: memref<32x128xf32, #tpu.memory_space<vmem>>, %arg3: memref<128x128xf32, #tpu.memory_space<vmem>>, %arg4: memref<16x128xi32, #tpu.memory_space<vmem>>, %arg5: memref<16x128xi32, #tpu.memory_space<vmem>>, %arg6: memref<16x128xf32, #tpu.memory_space<vmem>>) attributes {dimension_semantics = [#tpu.dimension_semantics<parallel>], iteration_bounds = array<i64: 1>, scalar_prefetch = 0 : i64, scratch_operands = 0 : i64, tpu.core_type = #tpu.core_type<tc>, window_params = [{transform_indices = @transform_0, window_bounds = array<i64: 16, 32>}, {pipeline_mode = #tpu.pipeline_mode<synchronous>, transform_indices = @transform_1, window_bounds = array<i64: 32, 128>}, {pipeline_mode = #tpu.pipeline_mode<synchronous>, transform_indices = @transform_2, window_bounds = array<i64: 128, 128>}, {transform_indices = @transform_3, window_bounds = array<i64: 16, 128>}, {transform_indices = @transform_4, window_bounds = array<i64: 16, 128>}, {transform_indices = @transform_5, window_bounds = array<i64: 16, 128>}]} {
    %c0 = arith.constant 0 : index
    %c0_0 = arith.constant 0 : index
    %0 = vector.load %arg1[%c0, %c0_0] : memref<16x32xf32, #tpu.memory_space<vmem>>, vector<16x32xf32>
    %c0_1 = arith.constant 0 : index
    %c0_2 = arith.constant 0 : index
    %1 = vector.load %arg2[%c0_1, %c0_2] : memref<32x128xf32, #tpu.memory_space<vmem>>, vector<32x128xf32>
    %cst = arith.constant dense<0.000000e+00> : vector<16x128xf32>
    %2 = tpu.matmul %0, %1, %cst {dimension_numbers = #tpu.dot_dimension_numbers<[1], [0], [0], [1], [0, 0, 1, 1], [], []>} : vector<16x32xf32>, vector<32x128xf32>, vector<16x128xf32> -> vector<16x128xf32>
    %cst_3 = arith.constant 0.000000e+00 : f32
    %3 = vector.broadcast %cst_3 : f32 to vector<16x128xf32>
    %4 = arith.maximumf %2, %3 : vector<16x128xf32>
    %c0_4 = arith.constant 0 : index
    %c0_5 = arith.constant 0 : index
    %5 = vector.load %arg4[%c0_4, %c0_5] : memref<16x128xi32, #tpu.memory_space<vmem>>, vector<16x128xi32>
    %c-2147483648_i32 = arith.constant -2147483648 : i32
    %6 = vector.broadcast %c-2147483648_i32 : i32 to vector<16x128xi32>
    %7 = arith.cmpi uge, %5, %6 : vector<16x128xi32>
    %cst_6 = arith.constant 2.000000e+00 : f32
    %8 = vector.broadcast %cst_6 : f32 to vector<16x128xf32>
    %9 = arith.mulf %4, %8 : vector<16x128xf32>
    %cst_7 = arith.constant 0.000000e+00 : f32
    %10 = vector.broadcast %cst_7 : f32 to vector<16x128xf32>
    %11 = arith.select %7, %9, %10 : vector<16x128xi1>, vector<16x128xf32>
    %c0_8 = arith.constant 0 : index
    %c0_9 = arith.constant 0 : index
    %12 = vector.load %arg3[%c0_8, %c0_9] : memref<128x128xf32, #tpu.memory_space<vmem>>, vector<128x128xf32>
    %cst_10 = arith.constant dense<0.000000e+00> : vector<16x128xf32>
    %13 = tpu.matmul %11, %12, %cst_10 {dimension_numbers = #tpu.dot_dimension_numbers<[1], [0], [0], [1], [0, 0, 1, 1], [], []>} : vector<16x128xf32>, vector<128x128xf32>, vector<16x128xf32> -> vector<16x128xf32>
    %cst_11 = arith.constant 0.000000e+00 : f32
    %14 = vector.broadcast %cst_11 : f32 to vector<16x128xf32>
    %15 = arith.maximumf %13, %14 : vector<16x128xf32>
    %c0_12 = arith.constant 0 : index
    %c0_13 = arith.constant 0 : index
    %16 = vector.load %arg5[%c0_12, %c0_13] : memref<16x128xi32, #tpu.memory_space<vmem>>, vector<16x128xi32>
    %c-2147483648_i32_14 = arith.constant -2147483648 : i32
    %17 = vector.broadcast %c-2147483648_i32_14 : i32 to vector<16x128xi32>
    %18 = arith.cmpi uge, %16, %17 : vector<16x128xi32>
    %cst_15 = arith.constant 2.000000e+00 : f32
    %19 = vector.broadcast %cst_15 : f32 to vector<16x128xf32>
    %20 = arith.mulf %15, %19 : vector<16x128xf32>
    %cst_16 = arith.constant 0.000000e+00 : f32
    %21 = vector.broadcast %cst_16 : f32 to vector<16x128xf32>
    %22 = arith.select %18, %20, %21 : vector<16x128xi1>, vector<16x128xf32>
    %c0_17 = arith.constant 0 : index
    %c0_18 = arith.constant 0 : index
    %23 = vector.load %arg6[%c0_17, %c0_18] : memref<16x128xf32, #tpu.memory_space<vmem>>, vector<16x128xf32>
    tpu.vector_store %arg6[%c0_17, %c0_18], %22 {strides = array<i32>} : memref<16x128xf32, #tpu.memory_space<vmem>>, vector<16x128xf32>,
    return
  }
  func.func @transform_0(%arg0: i32) -> (i32, i32) {
    %c0_i32 = arith.constant 0 : i32
    %c0_i32_0 = arith.constant 0 : i32
    return %arg0, %c0_i32 : i32, i32
  }
  func.func @transform_1(%arg0: i32) -> (i32, i32) {
    %c0_i32 = arith.constant 0 : i32
    %c0_i32_0 = arith.constant 0 : i32
    %c0_i32_1 = arith.constant 0 : i32
    return %c0_i32, %c0_i32_0 : i32, i32
  }
  func.func @transform_2(%arg0: i32) -> (i32, i32) {
    %c0_i32 = arith.constant 0 : i32
    %c0_i32_0 = arith.constant 0 : i32
    %c0_i32_1 = arith.constant 0 : i32
    return %c0_i32, %c0_i32_0 : i32, i32
  }
  func.func @transform_3(%arg0: i32) -> (i32, i32) {
    %c0_i32 = arith.constant 0 : i32
    %c0_i32_0 = arith.constant 0 : i32
    return %arg0, %c0_i32 : i32, i32
  }
  func.func @transform_4(%arg0: i32) -> (i32, i32) {
    %c0_i32 = arith.constant 0 : i32
    %c0_i32_0 = arith.constant 0 : i32
    return %arg0, %c0_i32 : i32, i32
  }
  func.func @transform_5(%arg0: i32) -> (i32, i32) {
    %c0_i32 = arith.constant 0 : i32
    %c0_i32_0 = arith.constant 0 : i32
    return %arg0, %c0_i32 : i32, i32
  }
}

</mosaic_0001>

<bundles_post_ra>
// kernel: tpu_custom_call.1
= control target key start
LH: loop header
LB: loop body
LE: loop exit
PB: predicated region body
PF: predicated region fallthrough
CT: control target
= control target key end

     0   :  { %10 = vsyncpa [#allocation3], 0  ;;  %s485_s0 = inlined_call_operand.hbm [shape: f32[16,32], index: 0, kind: input, shape index: {}]   ;;  %s486_s1 = inlined_call_operand.hbm [shape: f32[32,128], index: 1, kind: input, shape index: {}]   ;;  %s487_s2 = inlined_call_operand.hbm [shape: f32[128,128], index: 2, kind: input, shape index: {}]   ;;  %s488_s3 = inlined_call_operand.hbm [shape: u32[16,128], index: 3, kind: input, shape index: {}]   ;;  %s489_s4 = inlined_call_operand.hbm [shape: u32[16,128], index: 4, kind: input, shape index: {}]   ;;  %s490_s5 = inlined_call_operand.hbm [shape: f32[16,128], index: 5, kind: output, shape index: {}]  }
   0x1   :  { %11 = vsyncpa [#allocation6], 0 }
   0x2   :  { %12 = vsyncpa [#allocation9], 0 }
   0x3   :  { %13 = vsyncpa [#allocation4], 0  ;;  %s31_s20 = sshll.u32 %s486_s1, 4  ;;  %s409_s21 = smov [#allocation5]   ;;  %s32_s20 = int_to_ptr.hbm [resolvable:$true] %s31_s20 }
   0x4   :  { %s33_s22 = sshll.u32 %s409_s21, 4  ;;  %s57_s25 = sshll.u32 %s488_s3, 4  ;;  %s34_s22 = int_to_ptr.vmem [resolvable:$true] %s33_s22  ;;  %s58_s25 = int_to_ptr.hbm [resolvable:$true] %s57_s25 }
   0x5   :  { %s410_s26 = smov 128   ;;  %s411_s27 = smov 8  }
   0x6   :  { %39 = dma.hbm_to_vmem [thread:$0]  %s32_s20, 512, %s34_s22, [#allocation6], %s410_s26, %s410_s26, %s411_s27  }
   0x7   :  { %s412_s28 = smov [#allocation8]   ;;  %s18_s1 = sshll.u32 %s485_s0, 4  ;;  %s19_s1 = int_to_ptr.hbm [resolvable:$true] %s18_s1 }
   0x8   :  { %s59_s29 = sshll.u32 %s412_s28, 4  ;;  %s44_s8 = sshll.u32 %s487_s2, 4  ;;  %s60_s29 = int_to_ptr.vmem [resolvable:$true] %s59_s29  ;;  %s45_s8 = int_to_ptr.hbm [resolvable:$true] %s44_s8 }
   0x9   :  { %65 = dma.hbm_to_vmem [thread:$0]  %s58_s25, 256, %s60_s29, [#allocation9], %s410_s26, %s410_s26, %s411_s27  }
   0xa   :  { %s413_s9 = smov [#allocation2]   ;;  %s414_s11 = smov [#allocation7]  }
   0xb   :  { %s20_s10 = sshll.u32 %s413_s9, 4  ;;  %s46_s0 = sshll.u32 %s414_s11, 4  ;;  %s21_s10 = int_to_ptr.vmem [resolvable:$true] %s20_s10  ;;  %s47_s0 = int_to_ptr.vmem [resolvable:$true] %s46_s0 }
   0xc   :  { %26 = dma.hbm_to_vmem [thread:$0]  %s19_s1, 256, %s21_s10, [#allocation3], %s410_s26, %s410_s26, %s411_s27  }
   0xd   :  { %s70_s14 = sshll.u32 %s489_s4, 4  ;;  %s415_s2 = smov [#allocation10]   ;;  %s71_s14 = int_to_ptr.hbm [resolvable:$true] %s70_s14 }
   0xe   :  { %52 = dma.hbm_to_vmem [thread:$0]  %s45_s8, 2048, %s47_s0, [#allocation6], %s410_s26, %s410_s26, %s411_s27  }
   0xf   :  { %s72_s15 = sshll.u32 %s415_s2, 4  ;;  %s73_s15 = int_to_ptr.vmem [resolvable:$true] %s72_s15 }
  0x10   :  { %78 = dma.hbm_to_vmem [thread:$0]  %s71_s14, 256, %s73_s15, [#allocation9], %s410_s26, %s410_s26, %s411_s27  }
  0x11   :  { %401 = dma.done.wait [#allocation3], 256  }
  0x12   :  { %402 = vsyncadd [#allocation3], 4294967040 }
  0x13   :  { %403 = dma.done.wait [#allocation6], 2560  }
  0x14   :  { %404 = vsyncadd [#allocation6], 4294964736 }
  0x15   :  { %405 = dma.done.wait [#allocation9], 512  }
  0x16   :  { %406 = vsyncadd [#allocation9], 4294966784  ;;  %v104_v0 = vld [vmem:[#allocation5 + $0x18] sm:$0xff]  ;;  %v103_v1 = vld [vmem:[#allocation5 + $0x10] sm:$0xff]  ;;  %vm105_vm0 = vcmask 261120   ;;  %s416_s4 = smov [#allocation11]  }
  0x17   :  { %124 = vmatpush.msra.mxu0 %v104_v0  ;;  %v102_v2 = vld [vmem:[#allocation5 + $0x8] sm:$0xff]  ;;  %v164_v3 = vld [vmem:[#allocation7 + $0x78] sm:$0xff]  ;;  %v163_v4 = vld [vmem:[#allocation7 + $0x70] sm:$0xff]  ;;  %s208_s16 = sshll.u32 %s416_s4, 4  ;;  %s210_s19 = sshll.u32 %s490_s5, 4  ;;  %s209_s16 = int_to_ptr.vmem [resolvable:$true] %s208_s16  ;;  %s211_s19 = int_to_ptr.hbm [resolvable:$true] %s210_s19 }
  0x18   :  { %165 = vmatpush.msra.mxu1 %v164_v3  ;;  %v101_v5 = vld [vmem:[#allocation5] sm:$0xff]  ;;  %v162_v6 = vld [vmem:[#allocation7 + $0x68] sm:$0xff]  ;;  %233 = vmatpush.msra.mxu2 %v164_v3  ;;  %v99_v7 = vld [vmem:[#allocation2] sm:$0xff] }
  0x19   :  { %125 = vmatpush.msra.mxu0 %v103_v1  ;;  %v161_v8 = vld [vmem:[#allocation7 + $0x60] sm:$0xff]  ;;  %v160_v9 = vld [vmem:[#allocation7 + $0x58] sm:$0xff]  ;;  %v159_v10 = vld [vmem:[#allocation7 + $0x50] sm:$0xff] }
  0x1a   :  { %166 = vmatpush.msra.mxu1 %v163_v4  ;;  %234 = vmatpush.msra.mxu2 %v163_v4  ;;  %v158_v11 = vld [vmem:[#allocation7 + $0x48] sm:$0xff]  ;;  %v100_v12 = vld [vmem:[#allocation2 + $0x8] sm:$0xff]  ;;  %v157_v13 = vld [vmem:[#allocation7 + $0x40] sm:$0xff] }
  0x1b   :  { %126 = vmatpush.msra.mxu0 %v102_v2  ;;  %v156_v14 = vld [vmem:[#allocation7 + $0x38] sm:$0xff]  ;;  %v155_v15 = vld [vmem:[#allocation7 + $0x30] sm:$0xff]  ;;  %v154_v16 = vld [vmem:[#allocation7 + $0x28] sm:$0xff] }
  0x1c   :  { %167 = vmatpush.msra.mxu1 %v162_v6  ;;  %235 = vmatpush.msra.mxu2 %v162_v6  ;;  %v153_v17 = vld [vmem:[#allocation7 + $0x20] sm:$0xff]  ;;  %v152_v18 = vld [vmem:[#allocation7 + $0x18] sm:$0xff]  ;;  %v151_v19 = vld [vmem:[#allocation7 + $0x10] sm:$0xff] }
  0x1d   :  { %127 = vmatpush.msra.mxu0 %v101_v5  ;;  %v150_v20 = vld [vmem:[#allocation7 + $0x8] sm:$0xff]  ;;  %v149_v21 = vld [vmem:[#allocation7] sm:$0xff]  ;;  %v190_v32 = vld [vmem:[#allocation10] sm:$0xff] }
  0x1e   :  { %225 = vmatmul.msk.f32.vlgmr.msra.gmra.mxu0 %vm105_vm0, %v99_v7  ;;  %168 = vmatpush.msra.mxu1 %v161_v8  ;;  %v137_v22 = vld [vmem:[#allocation8] sm:$0xff]  ;;  %v138_v27 = vld [vmem:[#allocation8 + $0x8] sm:$0xff]  ;;  %v231_v33 = vxor.u32 2147483648, %v190_v32  ;;  %v191_v38 = vld [vmem:[#allocation10 + $0x8] sm:$0xff] }
  0x1f   :  { %236 = vmatpush.msra.mxu2 %v161_v8  ;;  %v227_v23 = vxor.u32 2147483648, %v137_v22  ;;  %v228_v28 = vxor.u32 2147483648, %v138_v27  ;;  %v232_v39 = vxor.u32 2147483648, %v191_v38 }
  0x20   :  { %169 = vmatpush.msra.mxu1 %v160_v9  ;;  %vm194_vm3 = vcmp.ge.s32.totalorder %v231_v33, 0 }
  0x21   :  { %237 = vmatpush.msra.mxu2 %v160_v9  ;;  %vm141_vm1 = vcmp.ge.s32.totalorder %v227_v23, 0  ;;  %vm144_vm2 = vcmp.ge.s32.totalorder %v228_v28, 0  ;;  %vm197_vm4 = vcmp.ge.s32.totalorder %v232_v39, 0 }
  0x22   :  { %170 = vmatpush.msra.mxu1 %v159_v10 }
  0x23   :  { %238 = vmatpush.msra.mxu2 %v159_v10 }
  0x24   :  { %171 = vmatpush.msra.mxu1 %v158_v11 }
  0x25   :  { %239 = vmatpush.msra.mxu2 %v158_v11 }
  0x26   :  { %226 = vmatmul.msk.f32.gmra.mxu0 %vm105_vm0, %v100_v12  ;;  %172 = vmatpush.msra.mxu1 %v157_v13 }
  0x27   :  { %240 = vmatpush.msra.mxu2 %v157_v13 }
  0x28   :  { %173 = vmatpush.msra.mxu1 %v156_v14 }
  0x29   :  { %241 = vmatpush.msra.mxu2 %v156_v14 }
  0x2a   :  { %174 = vmatpush.msra.mxu1 %v155_v15 }
  0x2b   :  { %242 = vmatpush.msra.mxu2 %v155_v15 }
  0x2c   :  { %175 = vmatpush.msra.mxu1 %v154_v16 }
  0x2d   :  { %243 = vmatpush.msra.mxu2 %v154_v16 }
  0x2e   :  { %176 = vmatpush.msra.mxu1 %v153_v17 }
  0x2f   :  { %244 = vmatpush.msra.mxu2 %v153_v17 }
  0x30   :  { %177 = vmatpush.msra.mxu1 %v152_v18 }
  0x31   :  { %245 = vmatpush.msra.mxu2 %v152_v18 }
  0x32   :  { %178 = vmatpush.msra.mxu1 %v151_v19 }
  0x33   :  { %246 = vmatpush.msra.mxu2 %v151_v19 }
  0x34   :  { %179 = vmatpush.msra.mxu1 %v150_v20 }
  0x35   :  { %247 = vmatpush.msra.mxu2 %v150_v20 }
  0x36   :  { %180 = vmatpush.msra.mxu1 %v149_v21 }
  0x37   :  { %248 = vmatpush.msra.mxu2 %v149_v21 }
  0x9b   :  { %v129_v24 = vpop.f32.mrf.mxu0 }
  0x9c   :  { %v135_v25 = vmax.f32 %v129_v24, 0.0 }
  0x9e   :  { %v145_v26 = vmul.f32 2.0, %v135_v25 }
  0xa0   :  { %229 = vmatmul.msk.f32.vlgmr.msra.gmra.mxu1 %vm141_vm1, %v145_v26 }
  0xa3   :  { %v132_v29 = vpop.f32.mrf.mxu0 }
  0xa4   :  { %v136_v30 = vmax.f32 %v132_v29, 0.0 }
  0xa6   :  { %v146_v31 = vmul.f32 2.0, %v136_v30 }
  0xa8   :  { %230 = vmatmul.msk.f32.vlgmr.msra.gmra.mxu2 %vm144_vm2, %v146_v31 }
 0x11d   :  { %v182_v34 = vpop.f32.mrf.mxu1 }
 0x11e   :  { %v188_v35 = vmax.f32 %v182_v34, 0.0 }
 0x120   :  { %v198_v36 = vmul.f32 2.0, %v188_v35 }
 0x122   :  { %v200_v37 = vsel %vm194_vm3, %v198_v36, 0.0 }
 0x123   :  { %202 = vst [vmem:[#allocation11] sm:$0xff] %v200_v37 }
 0x12b   :  { %v185_v40 = vpop.f32.mrf.mxu2 }
 0x12c   :  { %v189_v41 = vmax.f32 %v185_v40, 0.0 }
 0x12e   :  { %v199_v42 = vmul.f32 2.0, %v189_v41 }
 0x130   :  { %v201_v43 = vsel %vm197_vm4, %v199_v42, 0.0 }
 0x131   :  { %203 = vst [vmem:[#allocation11 + $0x8] sm:$0xff] %v201_v43 }
 0x132   :  { %216 = dma.vmem_to_hbm [thread:$0]  %s209_s16, 256, %s211_s19, [#allocation4], %s410_s26, %s410_s26, %s411_s27  }
 0x133   :  { %407 = dma.done.wait [#allocation4], 256  }
 0x134   :  { %408 = vsyncadd [#allocation4], 4294967040 }
 0x135   :  { %221 = vsyncpa [#allocation3], 1 }
 0x136   :  { %222 = vsyncpa [#allocation6], 1 }
 0x137   :  { %223 = vsyncpa [#allocation9], 1 }
 0x138   :  { %224 = vsyncpa [#allocation4], 1 }

</bundles_post_ra>
